<compile_context>
chip_gen: v7x
topology: tpu7x:2x2x1
jax: 0.10.0
libtpu: 0.0.40
codegen_flags: <defaults>
</compile_context>

<pallas_src>
import functools

import jax
import jax.numpy as jnp
from jax.experimental import pallas as pl
from jax.experimental.pallas import tpu as pltpu

_MiB = 1024 * 1024


def _hardswish(x):
    # torch.nn.Hardswish: x * relu6(x + 3) / 6
    return x * jnp.clip(x + 3.0, 0.0, 6.0) * (1.0 / 6.0)


def _vmem_limit_bytes():
    """3/4 of physical VMEM, capped at 96 MiB (96 MiB on v5e/v6e, 48 MiB on v7x)."""
    try:
        cap = pltpu.get_tpu_info().vmem_capacity_bytes
    except Exception:
        cap = 128 * _MiB
    return int(min(96 * _MiB, (3 * cap) // 4))


def _pick_hw_tile(hw, target=2048):
    """Largest lane-aligned (multiple of 128) divisor of hw that is <= target."""
    best = None
    t = 128
    while t <= min(hw, target):
        if hw % t == 0:
            best = t
        t += 128
    return best if best is not None else hw


# ----------------------------------------------------------------------------
# Kernel 1: streamed stem (stand-in backbone) + hardswish + spatial-sum pool.
# grid = (image, hw-chunk, hw-tile-within-chunk); emits per-(image, chunk)
# partial pooled sums so the chunk axis can be sharded across TensorCores.
# ----------------------------------------------------------------------------
def _stem_pool_kernel(x_ref, wstem_ref, psum_ref):
    """x_ref: (Cin_tot, hw_tile) bf16 | wstem_ref: (Cin_tot, Cf) bf16
       psum_ref: (1, Cf) f32 -- partial spatial sum of un-normalized hardswish."""
    t = pl.program_id(2)

    @pl.when(t == 0)
    def _init():
        psum_ref[...] = jnp.zeros_like(psum_ref)

    # TODO(synk): the pretrained torchvision mobilenet_v3_large inverted-residual
    # feature trunk is not translated; this 1x1-conv stem stands in for it.
    # Bias is folded into the weight via a constant-1 input row.
    feat = jax.lax.dot_general(
        x_ref[...], wstem_ref[...],
        dimension_numbers=(((0,), (0,)), ((), ())),
        preferred_element_type=jnp.float32)                    # (hw_tile, Cf) f32

    # Hardswish with the *(1/6) folded into the final pooling scale (pool is
    # linear, so the scale commutes); f32 VPU math, bf16 only for the MXU sum.
    feat = (feat * jnp.clip(feat + 3.0, 0.0, 6.0)).astype(jnp.bfloat16)

    # Spatial sum on the MXU (ones-row matvec) instead of a VPU reduction --
    # the VPU is the saturated VLIW slot at real MobileNetV3 dims.
    hw_tile = feat.shape[0]
    ones_row = jnp.ones((1, hw_tile), jnp.bfloat16)
    psum_ref[...] += jax.lax.dot_general(
        ones_row, feat,
        dimension_numbers=(((1,), (0,)), ((), ())),
        preferred_element_type=jnp.float32)                    # (1, Cf) f32


# ----------------------------------------------------------------------------
# Kernel 2: combine partial sums -> mean pool -> classifier, batched over N.
# classifier[0] Linear -> classifier[1] Hardswish -> classifier[2] Dropout
# (identity in eval) -> classifier[3] NEW Linear(hidden -> num_classes).
# ----------------------------------------------------------------------------
def _classifier_kernel(ps_ref, w1_ref, b1_ref, w2_ref, b2_ref, out_ref, *,
                       pool_scale):
    # pool_scale = 1 / (6 * HW): finishes both the avg-pool and the stem
    # hardswish's 1/6 in a single multiply.
    pooled = jnp.sum(ps_ref[...], axis=(1, 2)) * pool_scale        # (N, Cf) f32
    h = jnp.dot(pooled.astype(jnp.bfloat16), w1_ref[...],
                preferred_element_type=jnp.float32) + b1_ref[...]
    h = _hardswish(h)                                              # classifier Hardswish keeps /6
    # classifier[2]: Dropout(p=0.2) -> identity in eval mode.
    logits = jnp.dot(h.astype(jnp.bfloat16), w2_ref[...],
                     preferred_element_type=jnp.float32) + b2_ref[...]
    out_ref[...] = logits.astype(out_ref.dtype)


def _prepare_inputs(x_nchw, params):
    """Host-side layout / padding / dtype prep."""
    wstem, bstem, w1, b1, w2, b2 = params
    n, cin, h, w = x_nchw.shape
    num_classes = w2.shape[1]
    cf = wstem.shape[1]

    # NCHW -> (N, Cin, H*W): pure reshape, HW lane-dense, Cin on sublanes.
    x = x_nchw.reshape(n, cin, h * w)

    # Fold bstem into the matmul: one constant-1 input row whose weight row is
    # the bias, then pad the contraction dim to a multiple of 16 (native bf16
    # sublane tile) with zero rows.
    cin_tot = ((cin + 1 + 15) // 16) * 16
    x = jnp.pad(x, ((0, 0), (0, cin_tot - cin), (0, 0)))
    x = x.at[:, cin, :].set(1.0)
    wstem_full = jnp.zeros((cin_tot, cf), jnp.float32)
    wstem_full = wstem_full.at[:cin, :].set(wstem)
    wstem_full = wstem_full.at[cin, :].set(bstem.reshape(-1))

    # Pad num_classes to a lane multiple so the logits store is unmasked.
    ncpad = (-num_classes) % 128
    if ncpad:
        w2 = jnp.pad(w2, ((0, 0), (0, ncpad)))
        b2 = jnp.pad(b2, ((0, 0), (0, ncpad)))

    # bf16 matmul operands (MXU-native); biases and accumulation stay f32.
    x = x.astype(jnp.bfloat16)
    wstem_full = wstem_full.astype(jnp.bfloat16)
    w1 = w1.astype(jnp.bfloat16)
    w2 = w2.astype(jnp.bfloat16)
    b1 = b1.astype(jnp.float32)
    b2 = b2.astype(jnp.float32)
    return x, (wstem_full, w1, b1, w2, b2), num_classes


def multimodel_forward(x_nchw, params, *, hw_tile=None, n_chunks=None):
    """x_nchw: (N, C_in, H, W) float32 images -> (N, num_classes) logits."""
    x, (wstem, w1, b1, w2, b2), num_classes = _prepare_inputs(x_nchw, params)
    n, cin_tot, hw = x.shape
    cf = wstem.shape[1]
    nc_pad = w2.shape[1]

    if hw_tile is None:
        hw_tile = _pick_hw_tile(hw, target=2048)
    assert hw % hw_tile == 0, (hw, hw_tile)
    n_hw_tiles = hw // hw_tile
    if n_chunks is None:
        # Split HW across 2 "parallel" chunks so v7x's two TensorCores both work
        # even at batch 1; harmless on single-TC parts.
        n_chunks = 2 if n_hw_tiles % 2 == 0 else 1
    assert n_hw_tiles % n_chunks == 0, (n_hw_tiles, n_chunks)
    tiles_per_chunk = n_hw_tiles // n_chunks

    vmem_limit = _vmem_limit_bytes()

    def x_index_map(i, c, t):
        return (i, 0, c * tiles_per_chunk + t)

    flops = 2 * n * hw * cin_tot * cf + 2 * n * hw * cf        # stem + MXU sum
    bytes_accessed = x.size * 2 + wstem.size * 2 + n * n_chunks * cf * 4

    # ---- kernel 1: streamed stem + pooled partial sums -----------------------
    psums = pl.pallas_call(
        _stem_pool_kernel,
        out_shape=jax.ShapeDtypeStruct((n, n_chunks, 1, cf), jnp.float32),
        grid_spec=pltpu.PrefetchScalarGridSpec(
            num_scalar_prefetch=0,
            grid=(n, n_chunks, tiles_per_chunk),
            in_specs=[
                # x: one spatial tile of one image per step (batch dim squeezed).
                pl.BlockSpec((None, cin_tot, hw_tile), x_index_map),
                # stem weight (with folded bias): resident in VMEM.
                pl.BlockSpec((cin_tot, cf), lambda i, c, t: (0, 0)),
            ],
            out_specs=pl.BlockSpec((None, None, 1, cf), lambda i, c, t: (i, c, 0, 0)),
        ),
        compiler_params=pltpu.CompilerParams(
            dimension_semantics=("parallel", "parallel", "arbitrary"),
            vmem_limit_bytes=vmem_limit),
        cost_estimate=pl.CostEstimate(flops=int(flops), transcendentals=0,
                                      bytes_accessed=int(bytes_accessed)),
    )(x, wstem)

    # ---- kernel 2: mean pool + classifier, batched over all images -----------
    pool_scale = 1.0 / (6.0 * hw)   # avg-pool 1/HW and the folded hardswish 1/6
    classifier = functools.partial(_classifier_kernel, pool_scale=pool_scale)
    logits = pl.pallas_call(
        classifier,
        out_shape=jax.ShapeDtypeStruct((n, nc_pad), jnp.float32),
        in_specs=[pl.BlockSpec(memory_space=pltpu.MemorySpace.VMEM)] * 5,
        out_specs=pl.BlockSpec(memory_space=pltpu.MemorySpace.VMEM),
        compiler_params=pltpu.CompilerParams(vmem_limit_bytes=vmem_limit),
    )(psums, w1, b1, w2, b2)

    return logits[:, :num_classes]


def multimodel_reference(x_nchw, params):
    """Pure-JAX reference (module semantics, matching operand quantization)."""
    wstem, bstem, w1, b1, w2, b2 = params
    hi = jax.lax.Precision.HIGHEST
    q = lambda a: a.astype(jnp.bfloat16).astype(jnp.float32)   # kernel operand dtype
    n, cin, h, w = x_nchw.shape
    x = q(x_nchw).reshape(n, cin, h * w)
    feat = jnp.einsum('nch,cf->nhf', x, q(wstem), precision=hi)
    feat = _hardswish(feat + q(bstem))
    pooled = jnp.mean(feat, axis=1)
    hdn = _hardswish(jnp.dot(q(pooled), q(w1), precision=hi) + b1)
    logits = jnp.dot(q(hdn), q(w2), precision=hi) + b2
    return logits


def init_params(key, c_in, c_feat, hidden, num_classes):
    k0, k1, k2, k3, k4, k5 = jax.random.split(key, 6)
    wstem = jax.random.normal(k0, (c_in, c_feat), jnp.float32) * 0.1
    bstem = jax.random.normal(k4, (1, c_feat), jnp.float32) * 0.05
    w1 = jax.random.normal(k1, (c_feat, hidden), jnp.float32) * (1.0 / jnp.sqrt(c_feat))
    b1 = jax.random.normal(k2, (1, hidden), jnp.float32) * 0.01
    # new_layers[0]: the replaced classifier Linear(hidden -> num_classes)
    w2 = jax.random.normal(k3, (hidden, num_classes), jnp.float32) * (1.0 / jnp.sqrt(hidden))
    b2 = jax.random.normal(k5, (1, num_classes), jnp.float32) * 0.01
    return wstem, bstem, w1, b1, w2, b2


if __name__ == "__main__":
    # Small stand-in dims (real mobilenet_v3_large: C_feat=960, hidden=1280,
    # input 3x224x224).  Lane-friendly toy sizes so all kernel paths run.
    N, C_IN, H, W = 2, 3, 32, 32
    C_FEAT, HIDDEN, NUM_CLASSES = 128, 128, 10

    key = jax.random.PRNGKey(0)
    kx, kp = jax.random.split(key)
    x = jax.random.normal(kx, (N, C_IN, H, W), jnp.float32)
    params = init_params(kp, C_IN, C_FEAT, HIDDEN, NUM_CLASSES)

    ref = jax.block_until_ready(multimodel_reference(x, params))

    # hw_tile=128 -> 8 spatial tiles -> 2 chunks x 4 tiles: exercises the
    # accumulator loop and the 2-way chunk (dual-TensorCore) split.
    out = jax.block_until_ready(multimodel_forward(x, params, hw_tile=128))
    assert out.shape == (N, NUM_CLASSES)
    assert bool(jnp.all(jnp.isfinite(out)))
    assert bool(jnp.allclose(out, ref, rtol=2e-2, atol=2e-2)), \
        float(jnp.max(jnp.abs(out - ref)))

    # Default (large-tile, single-chunk) path.
    out2 = jax.block_until_ready(multimodel_forward(x, params))
    assert bool(jnp.allclose(out2, ref, rtol=2e-2, atol=2e-2)), \
        float(jnp.max(jnp.abs(out2 - ref)))

    print("KERNEL_OK")
</pallas_src>

<mosaic_0001>
module attributes {stable_mosaic.version = 11 : i64} {
  func.func @_stem_pool_kernel(%arg0: i32, %arg1: i32, %arg2: i32, %arg3: memref<1x16x128xbf16, #tpu.memory_space<vmem>>, %arg4: memref<16x128xbf16, #tpu.memory_space<vmem>>, %arg5: memref<1x1x1x128xf32, #tpu.memory_space<vmem>>) attributes {dimension_semantics = [#tpu.dimension_semantics<parallel>, #tpu.dimension_semantics<parallel>, #tpu.dimension_semantics<arbitrary>], iteration_bounds = array<i64: 2, 2, 4>, scalar_prefetch = 0 : i64, scratch_operands = 0 : i64, tpu.core_type = #tpu.core_type<tc>, window_params = [{transform_indices = @transform_0, window_bounds = array<i64: 1, 16, 128>}, {pipeline_mode = #tpu.pipeline_mode<synchronous>, transform_indices = @transform_1, window_bounds = array<i64: 16, 128>}, {transform_indices = @transform_2, window_bounds = array<i64: 1, 1, 1, 128>}]} {
    %c0_i32 = arith.constant 0 : i32
    %0 = arith.cmpi eq, %arg2, %c0_i32 : i32
    %1 = arith.extui %0 : i1 to i32
    %c0_i32_0 = arith.constant 0 : i32
    %2 = arith.cmpi ne, %1, %c0_i32_0 : i32
    scf.if %2 {
      %cst_18 = arith.constant 0.000000e+00 : f32
      %23 = vector.broadcast %cst_18 : f32 to vector<1x128xf32>
      %c0_19 = arith.constant 0 : index
      %c0_20 = arith.constant 0 : index
      %c0_21 = arith.constant 0 : index
      %c0_22 = arith.constant 0 : index
      %24 = vector.load %arg5[%c0_19, %c0_20, %c0_21, %c0_22] : memref<1x1x1x128xf32, #tpu.memory_space<vmem>>, vector<1x1x1x128xf32>
      %25 = vector.shape_cast %24 : vector<1x1x1x128xf32> to vector<1x128xf32>
      %26 = vector.shape_cast %23 : vector<1x128xf32> to vector<1x1x1x128xf32>
      tpu.vector_store %arg5[%c0_19, %c0_20, %c0_21, %c0_22], %26 {strides = array<i32>} : memref<1x1x1x128xf32, #tpu.memory_space<vmem>>, vector<1x1x1x128xf32>,
    } else {
    }
    %c0 = arith.constant 0 : index
    %c0_1 = arith.constant 0 : index
    %c0_2 = arith.constant 0 : index
    %3 = vector.load %arg3[%c0, %c0_1, %c0_2] : memref<1x16x128xbf16, #tpu.memory_space<vmem>>, vector<1x16x128xbf16>
    %4 = vector.shape_cast %3 : vector<1x16x128xbf16> to vector<16x128xbf16>
    %c0_3 = arith.constant 0 : index
    %c0_4 = arith.constant 0 : index
    %5 = vector.load %arg4[%c0_3, %c0_4] : memref<16x128xbf16, #tpu.memory_space<vmem>>, vector<16x128xbf16>
    %cst = arith.constant dense<0.000000e+00> : vector<128x128xf32>
    %6 = tpu.matmul %4, %5, %cst {dimension_numbers = #tpu.dot_dimension_numbers<[0], [0], [1], [1], [0, 1, 1, 1], [], []>} : vector<16x128xbf16>, vector<16x128xbf16>, vector<128x128xf32> -> vector<128x128xf32>
    %cst_5 = arith.constant 3.000000e+00 : f32
    %7 = vector.broadcast %cst_5 : f32 to vector<128x128xf32>
    %8 = arith.addf %6, %7 : vector<128x128xf32>
    %cst_6 = arith.constant 0.000000e+00 : f32
    %cst_7 = arith.constant 6.000000e+00 : f32
    %9 = vector.broadcast %cst_6 : f32 to vector<128x128xf32>
    %10 = arith.maximumf %9, %8 : vector<128x128xf32>
    %11 = vector.broadcast %cst_7 : f32 to vector<128x128xf32>
    %12 = arith.minimumf %11, %10 : vector<128x128xf32>
    %13 = arith.mulf %6, %12 : vector<128x128xf32>
    %14 = arith.truncf %13 : vector<128x128xf32> to vector<128x128xbf16>
    %cst_8 = arith.constant 1.000000e+00 : bf16
    %15 = vector.broadcast %cst_8 : bf16 to vector<1x128xbf16>
    %c0_9 = arith.constant 0 : index
    %c0_10 = arith.constant 0 : index
    %c0_11 = arith.constant 0 : index
    %c0_12 = arith.constant 0 : index
    %16 = vector.load %arg5[%c0_9, %c0_10, %c0_11, %c0_12] : memref<1x1x1x128xf32, #tpu.memory_space<vmem>>, vector<1x1x1x128xf32>
    %17 = vector.shape_cast %16 : vector<1x1x1x128xf32> to vector<1x128xf32>
    %cst_13 = arith.constant dense<0.000000e+00> : vector<1x128xf32>
    %18 = tpu.matmul %15, %14, %cst_13 {dimension_numbers = #tpu.dot_dimension_numbers<[1], [0], [0], [1], [0, 0, 1, 1], [], []>} : vector<1x128xbf16>, vector<128x128xbf16>, vector<1x128xf32> -> vector<1x128xf32>
    %19 = arith.addf %17, %18 : vector<1x128xf32>
    %c0_14 = arith.constant 0 : index
    %c0_15 = arith.constant 0 : index
    %c0_16 = arith.constant 0 : index
    %c0_17 = arith.constant 0 : index
    %20 = vector.load %arg5[%c0_14, %c0_15, %c0_16, %c0_17] : memref<1x1x1x128xf32, #tpu.memory_space<vmem>>, vector<1x1x1x128xf32>
    %21 = vector.shape_cast %20 : vector<1x1x1x128xf32> to vector<1x128xf32>
    %22 = vector.shape_cast %19 : vector<1x128xf32> to vector<1x1x1x128xf32>
    tpu.vector_store %arg5[%c0_14, %c0_15, %c0_16, %c0_17], %22 {strides = array<i32>} : memref<1x1x1x128xf32, #tpu.memory_space<vmem>>, vector<1x1x1x128xf32>,
    return
  }
  func.func @transform_0(%arg0: i32, %arg1: i32, %arg2: i32) -> (i32, i32, i32) {
    %c4_i32 = arith.constant 4 : i32
    %0 = arith.muli %arg1, %c4_i32 : i32
    %1 = arith.addi %0, %arg2 : i32
    %c0_i32 = arith.constant 0 : i32
    %c0_i32_0 = arith.constant 0 : i32
    return %arg0, %c0_i32, %1 : i32, i32, i32
  }
  func.func @transform_1(%arg0: i32, %arg1: i32, %arg2: i32) -> (i32, i32) {
    %c0_i32 = arith.constant 0 : i32
    %c0_i32_0 = arith.constant 0 : i32
    %c0_i32_1 = arith.constant 0 : i32
    return %c0_i32, %c0_i32_0 : i32, i32
  }
  func.func @transform_2(%arg0: i32, %arg1: i32, %arg2: i32) -> (i32, i32, i32, i32) {
    %c0_i32 = arith.constant 0 : i32
    %c0_i32_0 = arith.constant 0 : i32
    %c0_i32_1 = arith.constant 0 : i32
    return %arg0, %arg1, %c0_i32, %c0_i32_0 : i32, i32, i32, i32
  }
}

</mosaic_0001>

<bundles_post_ra>
// kernel: tpu_custom_call.1
= control target key start
LH: loop header
LB: loop body
LE: loop exit
PB: predicated region body
PF: predicated region fallthrough
CT: control target
= control target key end

     0   :  { %s1371_s0 = inlined_call_operand.hbm [shape: bf16[2,16,1024], index: 0, kind: input, shape index: {}]   ;;  %s1372_s1 = inlined_call_operand.hbm [shape: bf16[16,128], index: 1, kind: input, shape index: {}]   ;;  %s1373_s2 = inlined_call_operand.hbm [shape: f32[2,2,1,128], index: 2, kind: output, shape index: {}]  }
   0x1   :  { %1391 = sst [smem:[#allocation19_spill]] %s1372_s1 }
   0x2   :  { %1392 = sst [smem:[#allocation20_spill]] %s1373_s2 }
   0x3   :  { %7 = vsyncpa [#allocation3], 0 }
   0x4   :  { %9 = vsyncpa [#allocation3 + $0x1], 0 }
   0x5   :  { %10 = vsyncpa [#allocation6], 0 }
   0x6   :  { %11 = vsyncpa [#allocation4], 0 }
   0x7   :  { %13 = vsyncpa [#allocation4 + $0x1], 0  ;;  %s1049_s9 = smov 0   ;;  %s1051_s10 = smov 0  }
   0x8   :  { %s1053_s11 = smov 0   ;;  %s1055_s12 = smov 0  }
   0x9   :  { %s1057_s13 = smov 0   ;;  %s1059_s14 = smov 0  }
   0xa   :  { %s1061_s15 = smov 0   ;;  %s1063_s16 = smov 0  }
   0xb   :  { %s1065_s17 = smov 0   ;;  %s1067_s18 = smov 0  }
   0xc   :  { %s1069_s19 = smov 0   ;;  %s1071_s20 = smov 0  }
   0xd   :  { %s1073_s21 = smov 0  }
   0xe LB: > { %1393 = sst [smem:[#allocation11_spill]] %s974_s9  ;;  %s598_s22 = sadd.s32 4294967295, %s1022_s21   ;;  %s1022_s21 = sphi %s1073_s21, %s19_s21   ;;  %s1018_s20 = sphi %s1071_s20, %s1441_s20   ;;  %s1014_s19 = sphi %s1069_s19, %s1440_s19   ;;  %s1010_s18 = sphi %s1067_s18, %s1439_s18   ;;  %s1006_s17 = sphi %s1065_s17, %s1438_s17   ;;  %s1002_s16 = sphi %s1063_s16, %s1437_s16   ;;  %s998_s15 = sphi %s1061_s15, %s1428_s15   ;;  %s994_s14 = sphi %s1059_s14, %s1436_s14   ;;  %s990_s13 = sphi %s1057_s13, %s1435_s13   ;;  %s986_s12 = sphi %s1055_s12, %s1434_s12   ;;  %s982_s11 = sphi %s1053_s11, %s1433_s11   ;;  %s978_s10 = sphi %s1051_s10, %s1432_s10   ;;  %s974_s9 = sphi %s1049_s9, %s1431_s9  }
   0xf   : > { %1394 = sst [smem:[#allocation12_spill]] %s1002_s16  ;;  %s599_s23 = sadd.s32 4294967294, %s1022_s21  }
  0x10   : > { %1395 = sst [smem:[#allocation13_spill]] %s1006_s17  ;;  %p58_p0 = scmp.ne.s32.totalorder %s994_s14, %s990_s13 }
  0x11   : > { %1396 = sst [smem:[#allocation14_spill]] %s1010_s18  ;;  %p59_p1 = scmp.eq.s32.totalorder %s1022_s21, 0 }
  0x12   : > { %1397 = sst [smem:[#allocation15_spill]] %s1022_s21  ;;  %p64_p2 = scmp.ne.s32.totalorder %s990_s13, %s986_s12 }
  0x13   : > { %p1118_p3 = scmp.eq.s32.totalorder %s598_s22, 0  ;;  %p1122_p4 = por %p59_p1, %p58_p0 }
  0x14   : > { %p110_p6 = scmp.ne.s32.totalorder %s982_s11, %s978_s10  ;;  %p111_p7 = scmp.eq.s32.totalorder %s598_s22, 15 }
  0x15   : > { %s1398_s24 = scalar_select %p1118_p3, 1, 0 }
  0x16   : > { %p1129_p5 = por %p1118_p3, %p64_p2  ;;  %p116_p8 = scmp.ne.s32.totalorder %s978_s10, %s974_s9 }
  0x17   : > { %p117_p9 = scmp.eq.s32.totalorder %s599_s23, 15  ;;  %p602_p10 = scmp.ge.s32.totalorder %s1022_s21, 1 }
  0x18   : > { %s1400_s27 = scalar_select %p1129_p5, 1, 0 }
  0x19   : > { %p1138_p11 = por %p111_p7, %p110_p6  ;;  %p124_p12 = scmp.lt.s32.totalorder %s1022_s21, 17 }
  0x1a   : > { %p1143_p13 = por %p117_p9, %p116_p8  ;;  %s1024_s3 = smov [#allocation5]  }
  0x1b   : > { %s1401_s28 = scalar_select %p1138_p11, 1, 0 }
  0x1c   : > { %s1403_s29 = scalar_select %p1143_p13, 1, 0 }
  0x1d   : > { %1402 = sst [smem:[#allocation16_spill]] %s1401_s28  ;;  %p1147_p0 = pnand %p602_p10, %p124_p12 }
  0x1e   : > { %1404 = sst [smem:[#allocation17_spill]] %s1403_s29  ;;  %s136_s4 = sshll.u32 %s1024_s3, 4  ;;  %s137_s4 = int_to_ptr.vmem [resolvable:$true] %s136_s4 }
  0x1f   : > { %s1405_s30 = scalar_select %p1147_p0, 1, 0 }
  0x20   : > { %p691_p1 = pneg %p1147_p0  ;;  %p704_p6 = scmp.lt.s32.totalorder %s1022_s21, 16 }
  0x21   : > { %s1408_s1 = sld [smem:[#allocation19_spill]] }
  0x22   : > { %p1155_p2 = pnand %p691_p1, %p1118_p3  ;;  %p1162_p7 = pnand %p704_p6, %p1122_p4 }
  0x24   : > { %s1407_s6 = scalar_select %p1162_p7, 1, 0 }
  0x25   : > { %p824_p9 = pneg %p1155_p2 }
  0x27   : > { %s822_s12 = scalar_lea.hbm %s1408_s1, 128 }
  0x28   : > { %p823_p8 = scmp.ne.s32.totalorder %s1408_s1, %s822_s12  ;;  %p829_p1 = scmp.lt.u32.totalorder %s822_s12, %s1408_s1 }
  0x2a   : > { %p825_p10 = pnand %p824_p9, %p823_p8 }
  0x2c   : > { %p826_p12 = pneg %p825_p10 }
  0x2e   : > { %p831_p4 = pnand %p829_p1, %p826_p12 }
  0x30   : > { %834 = shalt.err (!%p831_p4)
}
  0x31   : > { %s835_s25 = scalar_lea.vmem %s137_s4, 128  ;;  %p843_p3 = scmp.lt.s32.totalorder %s137_s4, %s137_s4 }
  0x32   : > { %p836_p6 = scmp.ne.s32.totalorder %s137_s4, %s835_s25  ;;  %p844_p5 = scmp.lt.s32.totalorder %s835_s25, %s835_s25 }
  0x34   : > { %p838_p13 = pnand %p836_p6, %p824_p9  ;;  %p845_p0 = por %p844_p5, %p843_p3 }
  0x36   : > { %p839_p11 = pneg %p838_p13 }
  0x38   : > { %p846_p7 = pnand %p845_p0, %p839_p11 }
  0x3a   : > { %849 = shalt.err (!%p846_p7)
}
  0x3b   : > { %s1385_s7 = smov 64   ;;  %s1386_s26 = smov 4  }
  0x3c   : > { %694 = dma.hbm_to_vmem [thread:$0]  (!%p1155_p2), %s1408_s1, 128, %s137_s4, [#allocation6], %s1385_s7, %s1385_s7, %s1386_s26  }
  0x3d   : > { %s34_s22 = sadd.s32 1, %s1014_s19  ;;  %s31_s23 = sadd.s32 1, %s1010_s18 }
  0x3e   : > { %s38_s3 = sadd.s32 1, %s1018_s20  ;;  %p32_p3 = scmp.ge.s32.totalorder %s31_s23, 4 }
  0x3f   : > { %s600_s25 = sshll.u32 %s1014_s19, 2  ;;  %s51_s9 = sadd.s32 1, %s994_s14 }
  0x40   : > { %s43_s29 = sadd.s32 %s1010_s18, %s600_s25  ;;  %s1443_s23 = smov (%p32_p3, %s31_s23), 0 }
  0x41   : > { %s1445_s22 = smov (!%p32_p3, %s34_s22), %s1014_s19  ;;  %s150_s5 = sand.u32 1, %s994_s14  }
  0x42   : > { %s607_s21 = sshll.u32 %s1018_s20, 4  ;;  %p36_p5 = scmp.ge.s32.totalorder %s1445_s22, 2 }
  0x43   : > { %s605_s2 = sshll.u32 %s150_s5, 3  ;;  %s161_s8 = sadd.s32 %s607_s21, %s43_s29 }
  0x44   : > { %s1447_s22 = smov (%p36_p5, %s1445_s22), 0  ;;  %s1449_s3 = smov (!%p36_p5, %s38_s3), %s1018_s20 }
  0x45   : > { %1409 = sst [smem:[#allocation18_spill]] %s1447_s22  ;;  %s601_s4 = sshll.u32 %s1447_s22, 2 }
  0x46   : > { %s96_s12 = ssub.s32 %s1014_s19, %s1447_s22  ;;  %p40_p11 = scmp.ge.s32.totalorder %s1449_s3, 2 }
  0x47   : > { %s45_s25 = sadd.s32 %s601_s4, %s1443_s23  ;;  %s608_s26 = sshll.u32 %s161_s8, 6 }
  0x48   : > { %s47_s7 = ssub.s32 %s43_s29, %s45_s25  ;;  %s1451_s3 = smov (%p40_p11, %s1449_s3), 0 }
  0x49   : > { %s154_s21 = scalar_lea.vmem [#allocation2], %s605_s2  ;;  %s46_s18 = ssub.s32 %s1018_s20, %s1451_s3 }
  0x4a   : > { %s164_s1 = sshll.u32 %s154_s21, 4  ;;  %s1210_s17 = scalar_lea.hbm %s1371_s0, %s608_s26  ;;  %s1212_s1 = int_to_ptr.vmem [resolvable:$true] %s164_s1 }
  0x4b   : > { %s48_s22 = sor.u32 %s47_s7, %s46_s18  ;;  %s97_s4 = sor.u32 %s96_s12, %s46_s18 }
  0x4c   : > { %p49_p13 = scmp.eq.s32.totalorder %s48_s22, 0  ;;  %p98_p0 = scmp.eq.s32.totalorder %s97_s4, 0 }
  0x4d   : > { %s1410_s2 = sadd.s32 1, %s982_s11  ;;  %s1222_s25 = scalar_lea.sflag [#allocation3], %s150_s5 }
  0x4e   : > { %s1215_s29 = scalar_select %p49_p13, %s994_s14, %s51_s9  }
  0x4f   : > { %s1220_s8 = scalar_select %p98_p0, %s982_s11, %s1410_s2  }
  0x50   : > { %s850_s16 = scalar_lea.hbm %s1210_s17, 128  ;;  %p1411_p7 = scmp.ne.s32.totalorder %s1407_s6, 0 }
  0x51   : > { %p851_p2 = scmp.ne.s32.totalorder %s1210_s17, %s850_s16  ;;  %s855_s7 = scalar_lea.hbm %s1371_s0, 2048 }
  0x52   : > { %p852_p8 = pneg %p1411_p7  ;;  %p856_p12 = scmp.lt.u32.totalorder %s1210_s17, %s1371_s0 }
  0x53   : > { %p857_p1 = scmp.lt.u32.totalorder %s855_s7, %s850_s16  ;;  %p859_p6 = scmp.lt.u32.totalorder %s850_s16, %s1210_s17 }
  0x54   : > { %p853_p9 = pnand %p852_p8, %p851_p2 }
  0x55   : > { %p858_p4 = por %p857_p1, %p856_p12 }
  0x56   : > { %p854_p10 = pneg %p853_p9 }
  0x57   : > { %p860_p3 = por %p859_p6, %p858_p4 }
  0x59   : > { %p861_p5 = pnand %p860_p3, %p854_p10 }
  0x5b   : > { %864 = shalt.err (!%p861_p5)
}
  0x5c   : > { %s865_s22 = scalar_lea.vmem %s1212_s1, 128  ;;  %s1027_s5 = smov [#allocation2]  }
  0x5d   : > { %p866_p11 = scmp.ne.s32.totalorder %s1212_s1, %s865_s22  ;;  %s870_s12 = sshll.u32 %s1027_s5, 4  ;;  %s871_s12 = int_to_ptr.vmem [resolvable:$false] %s870_s12 }
  0x5e   : > { %s872_s21 = scalar_lea.vmem %s871_s12, 256  ;;  %p873_p2 = scmp.lt.s32.totalorder %s1212_s1, %s871_s12 }
  0x5f   : > { %p868_p13 = pnand %p866_p11, %p852_p8  ;;  %p874_p9 = scmp.lt.s32.totalorder %s872_s21, %s865_s22 }
  0x61   : > { %p869_p0 = pneg %p868_p13  ;;  %p875_p12 = por %p874_p9, %p873_p2 }
  0x63   : > { %p876_p1 = pnand %p875_p12, %p869_p0 }
  0x65   : > { %879 = shalt.err (!%p876_p1)
}
  0x66   : > { %s1028_s4 = smov 512   ;;  %s1412_s2 = smov 4  }
  0x67   : > { %s1413_s16 = smov 64   ;;  %p1414_p8 = scmp.ne.s32.totalorder %s1405_s30, 0 }
  0x68   : > { %698 = dma.hbm_to_vmem [thread:$0]  (!%p1411_p7), %s1210_s17, 128, %s1212_s1, %s1222_s25, %s1028_s4, %s1413_s16, %s1412_s2  }
  0x69   : > { %176 = sbr.rel (%p1414_p8) target bundleno = 717 (0x2cd), region = 28  ;;  %s178_s18 = sand.u32 (!%p1414_p8), 1, %s990_s13  }
  0x6a   : > { %s610_s28 = sshll.u32 (!%p1414_p8), %s178_s18, 3  ;;  %s179_s7 = scalar_lea.sflag (!%p1414_p8), [#allocation3], %s178_s18 }
  0x6b   : > { %s182_s26 = scalar_lea.vmem (!%p1414_p8), [#allocation2], %s610_s28  ;;  %p1415_p10 = scmp.ne.s32.totalorder (!%p1414_p8), %s1400_s27, 0 }
  0x70   : > { %961 = dma.done.wait (%p1415_p10), %s179_s7, 128  }
  0x71   : > { %963 = vsyncadd (%p1415_p10), %s179_s7, 4294967168  ;;  %p1416_p4 = scmp.ne.s32.totalorder %s1398_s24, 0 }
  0x73   : > { %965 = dma.done.wait (%p1416_p4), [#allocation6], 128  }
  0x74   : > { %967 = vsyncadd (%p1416_p4), [#allocation6], 4294967168  ;;  %s204_s1 = sand.u32 1, %s978_s10   ;;  %p612_p7 = scmp.ne.s32.totalorder %s998_s15, 0 }
  0x75   : > { %s1266_s17 = scalar_lea.vmem [#allocation7], %s204_s1  ;;  %v1029_v0 = vmov (!%p612_p7), 0.0  }
  0x76   : > { %213 = sbr.rel (%p612_p7) target bundleno = 125 (0x7d), region = 40  ;;  %214 = vst [vmem:[%s1266_s17] sm:$0x1] (!%p612_p7), %v1029_v0 }
  0x7d PF: > { %v820_v1 = vld [vmem:[%s182_s26] sm:$0xff]   ;;  %v821_v2 = vld [vmem:[#allocation5] sm:$0xff]   ;;  %vm247_vm0 = vcmask 130048   ;;  %v1030_v11 = vmov 0.0   ;;  %vm1031_vm1 = vmmov 0   ;;  %s1417_s15 = sld [smem:[#allocation13_spill]] }
  0x7e   : > { %225 = vxpose.xlu0.c.b16.start.end [1/1] (short) %v820_v1, 128  ;;  %645 = vmatprep.subr.bf16.mxu0 %v821_v2  ;;  %s1418_s24 = sld [smem:[#allocation12_spill]]  ;;  %s1419_s30 = sld [smem:[#allocation16_spill]] }
  0x7f   : > { %646 = vmatpush3.bf16.msra.mxu0 %v821_v2  ;;  %663 = vmatprep.subr.bf16.mxu1 %v1030_v11  ;;  %s499_s9 = sshll.u32 %s1266_s17, 4  ;;  %s1420_s12 = sld [smem:[#allocation20_spill]]  ;;  %s1296_s9 = int_to_ptr.vmem [resolvable:$true] %s499_s9 }
  0x80   : > { %679 = vmatprep.mubr.msk.bf16.mxu1 %vm1031_vm1, %v1030_v11  ;;  %s485_s2 = scalar_lea.sflag [#allocation4], %s204_s1  ;;  %s880_s16 = scalar_lea.vmem %s1296_s9, 16 }
  0x81   : > { %p881_p6 = scmp.ne.s32.totalorder %s1296_s9, %s880_s16  ;;  %s1033_s18 = smov [#allocation7]  }
  0x82   : > { %s884_s28 = sshll.u32 %s1033_s18, 4  ;;  %s885_s28 = int_to_ptr.vmem [resolvable:$false] %s884_s28 }
  0x83   : > { %s623_s27 = sshll.u32 %s1417_s15, 1  ;;  %s886_s7 = scalar_lea.vmem %s885_s28, 32 }
  0x84   : > { %s495_s6 = sadd.s32 %s1418_s24, %s623_s27  ;;  %p1422_p3 = scmp.ne.s32.totalorder %s1419_s30, 0 }
  0x85   : > { %s624_s25 = sshll.u32 %s495_s6, 4  ;;  %s1421_s4 = smov %s1420_s12 }
  0x86   : > { %s1294_s21 = scalar_lea.hbm %s1420_s12, %s624_s25  ;;  %p882_p5 = pnand %p881_p6, %p1422_p3 }
  0x87   : > { %p887_p13 = scmp.lt.s32.totalorder %s1296_s9, %s885_s28  ;;  %p888_p0 = scmp.lt.s32.totalorder %s886_s7, %s880_s16 }
  0x88   : > { %p883_p11 = pneg %p882_p5 }
  0x89   : > { %p889_p2 = por %p888_p0, %p887_p13 }
  0x8b   : > { %p890_p9 = pnand %p889_p2, %p883_p11 }
  0xe4   : > { %v233_v3 = vpop.trf.xlu0 }
  0xe5   : > { %647 = vmatprep.mubr.msk.bf16.mxu0 %vm247_vm0, %v233_v3 }
  0xe8   : > { %v234_v4 = vpop.trf.xlu0 }
  0xe9   : > { %648 = vmatmul.mubr.msk.bf16.vlgmr.msra.gmra.mrb[0].mxu0 %vm247_vm0, %v234_v4 }
  0xec   : > { %v235_v5 = vpop.trf.xlu0 }
  0xed   : > { %651 = vmatprep.mubr.msk.bf16.mxu0 %vm247_vm0, %v235_v5 }
  0xf0   : > { %v236_v6 = vpop.trf.xlu0 }
  0xf1   : > { %652 = vmatmul.mubr.msk.bf16.gmra.mrb[4].mxu0 %vm247_vm0, %v236_v6 }
  0xf4   : > { %v237_v7 = vpop.trf.xlu0 }
  0xf5   : > { %655 = vmatprep.mubr.msk.bf16.mxu0 %vm247_vm0, %v237_v7 }
  0xf8   : > { %v238_v8 = vpop.trf.xlu0 }
  0xf9   : > { %656 = vmatmul.mubr.msk.bf16.gmra.mrb[8].mxu0 %vm247_vm0, %v238_v8 }
  0xfc   : > { %v239_v9 = vpop.trf.xlu0 }
  0xfd   : > { %659 = vmatprep.mubr.msk.bf16.mxu0 %vm247_vm0, %v239_v9 }
 0x100   : > { %v240_v10 = vpop.trf.xlu0 }
 0x101   : > { %660 = vmatmul.mubr.msk.bf16.gmra.mrb[12].mxu0 %vm247_vm0, %v240_v10 }
 0x1bc   : > { %v649_v12 = vpop.f32.mrb[0].mxu0 }
 0x1bd   : > { %v371_v13 = vadd.f32 3.0, %v649_v12  ;;  %v306_v14 = vpop.f32.mrb[1].mxu0 }
 0x1be   : > { %v369_v15 = vadd.f32 3.0, %v306_v14  ;;  %v650_v16 = vpop.f32.mrb[2].mxu0 }
 0x1bf   : > { %v387_v17 = vmax.f32 %v371_v13, 0.0  ;;  %v372_v18 = vadd.f32 3.0, %v650_v16  ;;  %v309_v19 = vpop.f32.mrb[3].mxu0 }
 0x1c0   : > { %v385_v20 = vmax.f32 %v369_v15, 0.0  ;;  %v370_v21 = vadd.f32 3.0, %v309_v19 }
 0x1c1   : > { %v403_v22 = vmin.f32 %v387_v17, 6.0  ;;  %v388_v23 = vmax.f32 %v372_v18, 0.0 }
 0x1c2   : > { %v401_v24 = vmin.f32 %v385_v20, 6.0  ;;  %v386_v25 = vmax.f32 %v370_v21, 0.0 }
 0x1c3   : > { %v404_v26 = vmin.f32 %v388_v23, 6.0  ;;  %v419_v29 = vmul.f32 %v649_v12, %v403_v22 }
 0x1c4   : > { %v402_v27 = vmin.f32 %v386_v25, 6.0  ;;  %v653_v28 = vpop.f32.mrb[4].mxu0  ;;  %v417_v33 = vmul.f32 %v401_v24, %v306_v14 }
 0x1c5   : > { %v420_v30 = vmul.f32 %v650_v16, %v404_v26  ;;  %v375_v31 = vadd.f32 3.0, %v653_v28  ;;  %v322_v32 = vpop.f32.mrb[5].mxu0 }
 0x1c6   : > { %v418_v34 = vmul.f32 %v402_v27, %v309_v19  ;;  %v373_v35 = vadd.f32 3.0, %v322_v32  ;;  %v654_v36 = vpop.f32.mrb[6].mxu0 }
 0x1c7   : > { %v434_v37 = vpack.c.bf16 %v420_v30, %v419_v29  ;;  %v391_v38 = vmax.f32 %v375_v31, 0.0  ;;  %v376_v39 = vadd.f32 3.0, %v654_v36  ;;  %v325_v40 = vpop.f32.mrb[7].mxu0 }
 0x1c8   : > { %v389_v41 = vmax.f32 %v373_v35, 0.0  ;;  %v374_v42 = vadd.f32 3.0, %v325_v40  ;;  %v433_v43 = vpack.c.bf16 %v418_v34, %v417_v33 }
 0x1c9   : > { %v407_v44 = vmin.f32 %v391_v38, 6.0  ;;  %v392_v45 = vmax.f32 %v376_v39, 0.0  ;;  %v441_v38 = vld [vmem:[%s1266_s17] sm:$0x1] }
 0x1ca   : > { %v405_v46 = vmin.f32 %v389_v41, 6.0  ;;  %v390_v47 = vmax.f32 %v374_v42, 0.0  ;;  %664 = vmatpush3.bf16.msra.mxu1 %v433_v43 }
 0x1cb   : > { %v408_v48 = vmin.f32 %v392_v45, 6.0  ;;  %665 = vmatprep.subr.bf16.mxu1 %v1030_v11  ;;  %v423_v51 = vmul.f32 %v653_v28, %v407_v44 }
 0x1cc   : > { %v406_v49 = vmin.f32 %v390_v47, 6.0  ;;  %v657_v50 = vpop.f32.mrb[8].mxu0  ;;  %v421_v55 = vmul.f32 %v405_v46, %v322_v32 }
 0x1cd   : > { %v424_v52 = vmul.f32 %v654_v36, %v408_v48  ;;  %v379_v53 = vadd.f32 3.0, %v657_v50  ;;  %v338_v54 = vpop.f32.mrb[9].mxu0 }
 0x1ce   : > { %v422_v56 = vmul.f32 %v406_v49, %v325_v40  ;;  %v377_v57 = vadd.f32 3.0, %v338_v54  ;;  %v658_v58 = vpop.f32.mrb[10].mxu0  ;;  %666 = vmatpush3.bf16.msra.mxu1 %v434_v37  ;;  %v1032_v37 = vmov 1065369472  }
 0x1cf   : > { %v436_v59 = vpack.c.bf16 %v424_v52, %v423_v51  ;;  %v395_v60 = vmax.f32 %v379_v53, 0.0  ;;  %v380_v61 = vadd.f32 3.0, %v658_v58  ;;  %v341_v62 = vpop.f32.mrb[11].mxu0  ;;  %667 = vmatprep.subr.bf16.mxu1 %v1030_v11 }
 0x1d0   : > { %v435_v63 = vpack.c.bf16 %v422_v56, %v421_v55  ;;  %v393_v0 = vmax.f32 %v377_v57, 0.0  ;;  %v378_v1 = vadd.f32 3.0, %v341_v62 }
 0x1d1   : > { %v411_v2 = vmin.f32 %v395_v60, 6.0  ;;  %v396_v3 = vmax.f32 %v380_v61, 0.0 }
 0x1d2   : > { %v409_v4 = vmin.f32 %v393_v0, 6.0  ;;  %v394_v5 = vmax.f32 %v378_v1, 0.0  ;;  %668 = vmatpush3.bf16.msra.mxu1 %v435_v63 }
 0x1d3   : > { %v412_v6 = vmin.f32 %v396_v3, 6.0  ;;  %669 = vmatprep.subr.bf16.mxu1 %v1030_v11  ;;  %v427_v9 = vmul.f32 %v657_v50, %v411_v2 }
 0x1d4   : > { %v410_v7 = vmin.f32 %v394_v5, 6.0  ;;  %v661_v8 = vpop.f32.mrb[12].mxu0  ;;  %v425_v14 = vmul.f32 %v409_v4, %v338_v54 }
 0x1d5   : > { %v428_v10 = vmul.f32 %v658_v58, %v412_v6  ;;  %v383_v12 = vadd.f32 3.0, %v661_v8  ;;  %v354_v13 = vpop.f32.mrb[13].mxu0 }
 0x1d6   : > { %v426_v15 = vmul.f32 %v410_v7, %v341_v62  ;;  %v381_v16 = vadd.f32 3.0, %v354_v13  ;;  %v662_v17 = vpop.f32.mrb[14].mxu0  ;;  %670 = vmatpush3.bf16.msra.mxu1 %v436_v59 }
 0x1d7   : > { %v438_v18 = vpack.c.bf16 %v428_v10, %v427_v9  ;;  %v399_v19 = vmax.f32 %v383_v12, 0.0  ;;  %v384_v20 = vadd.f32 3.0, %v662_v17  ;;  %v357_v21 = vpop.f32.mrb[15].mxu0  ;;  %671 = vmatprep.subr.bf16.mxu1 %v1030_v11 }
 0x1d8   : > { %v437_v22 = vpack.c.bf16 %v426_v15, %v425_v14  ;;  %v397_v23 = vmax.f32 %v381_v16, 0.0  ;;  %v382_v24 = vadd.f32 3.0, %v357_v21 }
 0x1d9   : > { %v415_v25 = vmin.f32 %v399_v19, 6.0  ;;  %v400_v26 = vmax.f32 %v384_v20, 0.0 }
 0x1da   : > { %v413_v27 = vmin.f32 %v397_v23, 6.0  ;;  %v398_v28 = vmax.f32 %v382_v24, 0.0  ;;  %672 = vmatpush3.bf16.msra.mxu1 %v437_v22 }
 0x1db   : > { %v416_v29 = vmin.f32 %v400_v26, 6.0  ;;  %673 = vmatprep.subr.bf16.mxu1 %v1030_v11  ;;  %v431_v31 = vmul.f32 %v661_v8, %v415_v25 }
 0x1dc   : > { %v414_v30 = vmin.f32 %v398_v28, 6.0  ;;  %v429_v33 = vmul.f32 %v413_v27, %v354_v13 }
 0x1dd   : > { %v432_v32 = vmul.f32 %v662_v17, %v416_v29 }
 0x1de   : > { %v430_v34 = vmul.f32 %v414_v30, %v357_v21  ;;  %674 = vmatpush3.bf16.msra.mxu1 %v438_v18 }
 0x1df   : > { %v440_v35 = vpack.c.bf16 %v432_v32, %v431_v31  ;;  %675 = vmatprep.subr.bf16.mxu1 %v1030_v11 }
 0x1e0   : > { %v439_v36 = vpack.c.bf16 %v430_v34, %v429_v33 }
 0x1e2   : > { %676 = vmatpush3.bf16.msra.mxu1 %v439_v36 }
 0x1e3   : > { %677 = vmatprep.subr.bf16.mxu1 %v1030_v11 }
 0x1e6   : > { %678 = vmatpush3.bf16.msra.mxu1 %v440_v35 }
 0x1e9   : > { %680 = vmatmul.mubr.bf16.vlgmr.msra.gmra.mrb[0].mxu1 %v1032_v37 }
 0x2bc   : > { %v476_v39 = vpop.f32.mrb[0].mxu1 }
 0x2bd   : > { %v482_v40 = vadd.f32 %v476_v39, %v441_v38  ;;  %v681_v41 = vpop.f32.mrb[1].mxu1 }
 0x2be   : > { %v479_v11 = vpop.f32.mrb[2].mxu1 }
 0x2bf   : > { %483 = vst [vmem:[%s1266_s17] sm:$0x1] %v482_v40  ;;  %v682_v42 = vpop.f32.mrb[3].mxu1 }
 0x2c0   : > { %893 = shalt.err (!%p890_p9)
}
 0x2c1   : > { %s894_s26 = scalar_lea.hbm %s1294_s21, 16  ;;  %s898_s15 = scalar_lea.hbm %s1421_s4, 64 }
 0x2c2   : > { %p895_p12 = scmp.ne.s32.totalorder %s1294_s21, %s894_s26  ;;  %p899_p10 = scmp.lt.u32.totalorder %s1294_s21, %s1421_s4 }
 0x2c3   : > { %p900_p4 = scmp.lt.u32.totalorder %s898_s15, %s894_s26  ;;  %p902_p6 = scmp.lt.u32.totalorder %s894_s26, %s1294_s21 }
 0x2c4   : > { %p896_p1 = pnand %p895_p12, %p1422_p3 }
 0x2c5   : > { %p901_p7 = por %p900_p4, %p899_p10 }
 0x2c6   : > { %p897_p8 = pneg %p896_p1 }
 0x2c7   : > { %p903_p5 = por %p902_p6, %p901_p7 }
 0x2c9   : > { %p904_p11 = pnand %p903_p5, %p897_p8 }
 0x2cb   : > { %907 = shalt.err (!%p904_p11)
}
 0x2cc   : > { %689 = dma.vmem_to_hbm [thread:$0]  (%p1422_p3), %s1296_s9, 16, %s1294_s21, %s485_s2  }
 0x2cd PF: > { %s1423_s6 = sld [smem:[#allocation15_spill]]  ;;  %s1424_s25 = sld [smem:[#allocation11_spill]] }
 0x2ce   : > { %s1425_s22 = sld [smem:[#allocation17_spill]] }
 0x2d3   : > { %p706_p13 = scmp.ge.s32.totalorder %s1423_s6, 2  ;;  %s511_s5 = sand.u32 1, %s1424_s25  }
 0x2d4   : > { %p1426_p0 = scmp.ne.s32.totalorder %s1425_s22, 0  ;;  %s512_s12 = scalar_lea.sflag [#allocation4], %s511_s5 }
 0x2d6   : > { %p700_p2 = pnand %p706_p13, %p1426_p0 }
 0x2d8   : > { %969 = dma.done.wait (!%p700_p2), %s512_s12, 16  }
 0x2d9   : > { %971 = vsyncadd (!%p700_p2), %s512_s12, 4294967280  ;;  %s19_s21 = sadd.s32 1, %s1423_s6   ;;  %s1428_s15 = sld [smem:[#allocation14_spill]] }
 0x2da   : > { %p1327_p9 = scmp.ge.s32.totalorder %s19_s21, 18   ;;  %s1429_s30 = sld [smem:[#allocation18_spill]] }
 0x2db   : > { %s1431_s9 = smov %s978_s10  ;;  %s1432_s10 = smov %s982_s11 }
 0x2dc   : > { %s1433_s11 = smov %s1220_s8  ;;  %s1434_s12 = smov %s990_s13 }
 0x2dd   : > { %s1435_s13 = smov %s994_s14  ;;  %s1436_s14 = smov %s1215_s29 }
 0x2de   : > { %s1437_s16 = smov %s1014_s19  ;;  %s1438_s17 = smov %s1018_s20 }
 0x2df   : > { %s1439_s18 = smov %s1443_s23  ;;  %s1441_s20 = smov %s1451_s3 }
 0x2e0   : > { %s1440_s19 = smov %s1429_s30  ;;  %18 = sbr.rel (!%p1327_p9) target bundleno = 14 (0xe), region = 81 }
 0x2e7   :  { %516 = vsyncpa [#allocation3], 1 }
 0x2e8   :  { %518 = vsyncpa [#allocation3 + $0x1], 1 }
 0x2e9   :  { %519 = vsyncpa [#allocation6], 1 }
 0x2ea   :  { %520 = vsyncpa [#allocation4], 1 }
 0x2eb   :  { %522 = vsyncpa [#allocation4 + $0x1], 1 }

</bundles_post_ra>
